<compile_context>
chip_gen: v6e
topology: v6e:2x2x1
jax: 0.10.0
libtpu: 0.0.40
codegen_flags: <defaults>
</compile_context>

<pallas_src>
import math

import jax
import jax.numpy as jnp
from jax.experimental import pallas as pl
from jax.experimental.pallas import tpu as pltpu

BN_EPS = 1e-5
_INV_SQRT2 = 1.0 / math.sqrt(2.0)


def _round_up(x, m):
    return (x + m - 1) // m * m


# ------------- Pass 1: global per-channel BatchNorm statistics (one read of x) -------------
def _bn_stats_kernel(x_ref, pilot_ref, sum_ref, sq_ref):
    # x_ref:     (Nb, Cin, Lpad)  zero-padded activation chunk
    # pilot_ref: (Cin, 1)         per-channel pilot mean (stability shift)
    # sum_ref/sq_ref: (1, Cin, 1) resident accumulators (one slab per parallel split)
    @pl.when(pl.program_id(1) == 0)
    def _():
        sum_ref[...] = jnp.zeros_like(sum_ref)
        sq_ref[...] = jnp.zeros_like(sq_ref)

    x = x_ref[...].astype(jnp.float32)                    # (Nb, Cin, Lpad)
    d = x - pilot_ref[...][None, :, :]                    # shifted for stability

    # Reduce the batch sub-axis first (tile adds), then the lane axis (XLU).
    sum_ref[0] += jnp.sum(jnp.sum(x, axis=0), axis=-1, keepdims=True)      # (Cin, 1)
    sq_ref[0] += jnp.sum(jnp.sum(d * d, axis=0), axis=-1, keepdims=True)   # (Cin, 1)


# ------------- Pass 2: fused BN(FMA) + GELU + conv(k=3) + dense concat -------------
def _make_dense_kernel(cin, cout, nb, l_real, l_pad):
    def kernel(x_ref, ss_ref, w_ref, b_ref, o_ref):
        # x_ref:  (Nb, Cin, Lpad)
        # ss_ref: (2*Cin, 1)   rows [0:Cin] = folded BN scale, [Cin:2Cin] = folded shift
        # w_ref:  (Cout, 3*Cin) stacked conv taps [W(:,:,0) | W(:,:,1) | W(:,:,2)]
        # b_ref:  (Cout, 1)
        # o_ref:  (Nb, Cin + Cout, Lpad)  fused [x ; conv(x)]
        scale = ss_ref[:cin, :]                            # (Cin, 1)
        shift = ss_ref[cin:, :]                            # (Cin, 1)
        w = w_ref[...]                                     # (Cout, 3*Cin)
        b = b_ref[...]                                     # (Cout, 1)

        lane = jax.lax.broadcasted_iota(jnp.int32, (cin, l_pad), 1)
        first_col = lane == 0
        last_col = lane == (l_pad - 1)

        for s in range(nb):                                # static unroll over Nb
            x = x_ref[s].astype(jnp.float32)               # (Cin, Lpad)
            o_ref[s, :cin, :] = x.astype(o_ref.dtype)      # dense-block passthrough

            xn = x * scale + shift                         # BN folded into one FMA
            # Exact (erf) GELU, matching nn.GELU(); erf runs on the EUP slot.
            h = 0.5 * xn * (1.0 + jax.lax.erf(xn * _INV_SQRT2))
            if l_real < l_pad:                             # zero the L padding region
                h = jnp.where(lane < l_real, h, 0.0)

            # Column shifts via XLU roll + one-column masks (no lane-slice concats).
            h_prev = jnp.where(first_col, 0.0, pltpu.roll(h, shift=1, axis=1))
            h_next = jnp.where(last_col, 0.0, pltpu.roll(h, shift=l_pad - 1, axis=1))

            # Conv1d(k=3, padding=1) as ONE stacked MXU matmul:
            #   y = W_stk @ [h_prev; h; h_next] + b
            hs = jnp.concatenate([h_prev, h, h_next], axis=0)          # (3*Cin, Lpad)
            y = jnp.dot(w, hs, preferred_element_type=jnp.float32) + b  # (Cout, Lpad)
            o_ref[s, cin:, :] = y.astype(o_ref.dtype)

    return kernel


def dense_layer(x_ncl, gamma, beta, w_oik, bias):
    """Forward of DenseLayer.

    x_ncl: (N, C_in, L)           PyTorch NCL layout, used directly (no transposes)
    gamma, beta: (C_in,)          BatchNorm1d affine params
    w_oik: (C_out, C_in, 3)       Conv1d weight (kernel_size=3)
    bias:  (C_out,)               Conv1d bias
    returns: (N, C_in + C_out, L)
    """
    n, cin, l = x_ncl.shape
    cout = w_oik.shape[0]
    itemsize = jnp.dtype(x_ncl.dtype).itemsize

    # ---- choose a lane-dense, VMEM-sized block: whole (padded) L, Nb samples/step ----
    l_pad = _round_up(l, 128)
    per_in = cin * l_pad * itemsize
    per_out = (cin + cout) * l_pad * itemsize
    nb = max(1, min(n, (2 << 20) // max(per_in, 1), (6 << 20) // max(per_out, 1)))
    n_chunks = pl.cdiv(n, nb)
    n_split = 2 if n_chunks >= 2 else 1          # v7x: both TensorCores on pass 1
    n_chunks = _round_up(n_chunks, n_split)
    n_pad = n_chunks * nb

    if (n_pad, l_pad) != (n, l):
        x_p = jnp.pad(x_ncl, ((0, n_pad - n), (0, 0), (0, l_pad - l)))
    else:
        x_p = x_ncl

    # Per-channel pilot mean (cheap, from sample 0): shifted sumsq avoids the
    # E[x^2]-E[x]^2 cancellation for channels with large DC offsets.
    pilot = jnp.mean(x_ncl[0].astype(jnp.float32), axis=-1, keepdims=True)   # (Cin, 1)

    cps = n_chunks // n_split
    sums_p, sqs_p = pl.pallas_call(
        _bn_stats_kernel,
        out_shape=(jax.ShapeDtypeStruct((n_split, cin, 1), jnp.float32),
                   jax.ShapeDtypeStruct((n_split, cin, 1), jnp.float32)),
        grid=(n_split, cps),
        in_specs=[
            pl.BlockSpec((nb, cin, l_pad), lambda s, i: (s * cps + i, 0, 0)),
            pl.BlockSpec((cin, 1), lambda s, i: (0, 0)),
        ],
        out_specs=(pl.BlockSpec((1, cin, 1), lambda s, i: (s, 0, 0)),
                   pl.BlockSpec((1, cin, 1), lambda s, i: (s, 0, 0))),
        compiler_params=pltpu.CompilerParams(
            dimension_semantics=("parallel", "arbitrary")),
        cost_estimate=pl.CostEstimate(
            flops=3 * n_pad * cin * l_pad,
            transcendentals=0,
            bytes_accessed=itemsize * n_pad * cin * l_pad),
    )(x_p, pilot)

    sums = jnp.sum(sums_p, axis=0)                         # (Cin, 1) exact global sums
    sqs = jnp.sum(sqs_p, axis=0)                           # (Cin, 1) sum((x - pilot)^2)

    count = jnp.float32(n * l)                             # real (unpadded) count
    pad_elems = jnp.float32(n_pad * l_pad - n * l)         # zero padding contribution
    sqs = sqs - pad_elems * pilot * pilot                  # padded zeros added (0-p)^2
    mean = sums / count
    var = jnp.maximum(sqs / count - (mean - pilot) ** 2, 0.0)   # biased variance
    inv_std = jax.lax.rsqrt(var + BN_EPS)
    scale = gamma.reshape(cin, 1).astype(jnp.float32) * inv_std
    shift = beta.reshape(cin, 1).astype(jnp.float32) - mean * scale
    ss = jnp.concatenate([scale, shift], axis=0)           # packed (2*Cin, 1)

    # Stacked conv taps: H = [h_prev; h; h_next]  <=>  W_stk = [W0 | W1 | W2]
    w_stk = jnp.concatenate(
        [w_oik[:, :, 0], w_oik[:, :, 1], w_oik[:, :, 2]], axis=1
    ).astype(jnp.float32)                                  # (Cout, 3*Cin)
    b2 = bias.reshape(cout, 1).astype(jnp.float32)

    # ---- pass 2: VMEM budget derived from the chosen tile (v7x: 64 MiB VMEM) ----
    in_block = nb * per_in
    out_block = nb * per_out
    temp_bytes = (5 * cin + 3 * cin + cout) * l_pad * 4    # xn/h/h_prev/h_next/hs/y f32
    vmem_limit = int(min(100 << 20,
                         max(32 << 20,
                             2 * (in_block + out_block) + temp_bytes + (1 << 20))))

    flops = 2 * (3 * cin) * cout * n_pad * l_pad
    bytes_accessed = itemsize * n_pad * l_pad * (2 * cin + cout)

    kernel = _make_dense_kernel(cin, cout, nb, l, l_pad)
    out_p = pl.pallas_call(
        kernel,
        out_shape=jax.ShapeDtypeStruct((n_pad, cin + cout, l_pad), x_ncl.dtype),
        grid=(n_chunks,),
        in_specs=[
            pl.BlockSpec((nb, cin, l_pad), lambda i: (i, 0, 0)),
            pl.BlockSpec((2 * cin, 1), lambda i: (0, 0)),
            pl.BlockSpec((cout, 3 * cin), lambda i: (0, 0)),
            pl.BlockSpec((cout, 1), lambda i: (0, 0)),
        ],
        out_specs=pl.BlockSpec((nb, cin + cout, l_pad), lambda i: (i, 0, 0)),
        compiler_params=pltpu.CompilerParams(
            dimension_semantics=("parallel",),             # v7x: split chunks over TCs
            vmem_limit_bytes=vmem_limit),
        cost_estimate=pl.CostEstimate(
            flops=flops,
            transcendentals=n_pad * l_pad * cin,
            bytes_accessed=bytes_accessed),
    )(x_p, ss, w_stk, b2)

    if (n_pad, l_pad) != (n, l):
        out_p = out_p[:n, :, :l]
    return out_p


def _reference(x_ncl, gamma, beta, w_oik, bias):
    """Pure-JAX reference: BN1d(train) -> GELU -> Conv1d(k=3,p=1) -> concat."""
    mean = jnp.mean(x_ncl, axis=(0, 2), keepdims=True)
    var = jnp.mean((x_ncl - mean) ** 2, axis=(0, 2), keepdims=True)
    xn = (x_ncl - mean) / jnp.sqrt(var + BN_EPS)
    xn = xn * gamma[None, :, None] + beta[None, :, None]
    h = 0.5 * xn * (1.0 + jax.lax.erf(xn * _INV_SQRT2))
    y = jax.lax.conv_general_dilated(
        h, w_oik, window_strides=(1,), padding=((1, 1),),
        dimension_numbers=("NCH", "OIH", "NCH"))
    y = y + bias[None, :, None]
    return jnp.concatenate([x_ncl, y], axis=1)


if __name__ == "__main__":
    # Small shapes consistent with the module: N=4, C_in=8, growth_rate=16, L=256.
    N, C_IN, GROWTH, L = 4, 8, 16, 256

    key = jax.random.PRNGKey(0)
    k_x, k_g, k_b, k_w, k_bias = jax.random.split(key, 5)

    x = jax.random.normal(k_x, (N, C_IN, L), dtype=jnp.float32)
    gamma = 1.0 + 0.1 * jax.random.normal(k_g, (C_IN,), dtype=jnp.float32)
    beta = 0.1 * jax.random.normal(k_b, (C_IN,), dtype=jnp.float32)
    w = 0.2 * jax.random.normal(k_w, (GROWTH, C_IN, 3), dtype=jnp.float32)
    bias = 0.05 * jax.random.normal(k_bias, (GROWTH,), dtype=jnp.float32)

    out = jax.jit(dense_layer)(x, gamma, beta, w, bias)
    out = jax.block_until_ready(out)

    ref = _reference(x, gamma, beta, w, bias)
    assert out.shape == (N, C_IN + GROWTH, L), out.shape
    assert jnp.allclose(out, ref, atol=1e-4, rtol=1e-4), float(
        jnp.max(jnp.abs(out - ref))
    )

    print("KERNEL_OK")
</pallas_src>

<mosaic_0001>
module attributes {stable_mosaic.version = 11 : i64} {
  func.func @_bn_stats_kernel(%arg0: i32, %arg1: i32, %arg2: memref<4x8x256xf32, #tpu.memory_space<vmem>>, %arg3: memref<8x1xf32, #tpu.memory_space<vmem>>, %arg4: memref<1x8x1xf32, #tpu.memory_space<vmem>>, %arg5: memref<1x8x1xf32, #tpu.memory_space<vmem>>) attributes {dimension_semantics = [#tpu.dimension_semantics<parallel>, #tpu.dimension_semantics<arbitrary>], iteration_bounds = array<i64: 1, 1>, scalar_prefetch = 0 : i64, scratch_operands = 0 : i64, tpu.core_type = #tpu.core_type<tc>, window_params = [{transform_indices = @transform_0, window_bounds = array<i64: 4, 8, 256>}, {pipeline_mode = #tpu.pipeline_mode<synchronous>, transform_indices = @transform_1, window_bounds = array<i64: 8, 1>}, {transform_indices = @transform_2, window_bounds = array<i64: 1, 8, 1>}, {transform_indices = @transform_3, window_bounds = array<i64: 1, 8, 1>}]} {
    %c0_i32 = arith.constant 0 : i32
    %0 = arith.cmpi eq, %arg1, %c0_i32 : i32
    %1 = arith.extui %0 : i1 to i32
    %c0_i32_0 = arith.constant 0 : i32
    %2 = arith.cmpi ne, %1, %c0_i32_0 : i32
    scf.if %2 {
      %cst_20 = arith.constant 0.000000e+00 : f32
      %27 = vector.broadcast %cst_20 : f32 to vector<1x8x1xf32>
      %c0_21 = arith.constant 0 : index
      %c0_22 = arith.constant 0 : index
      %c0_23 = arith.constant 0 : index
      %28 = vector.load %arg4[%c0_21, %c0_22, %c0_23] : memref<1x8x1xf32, #tpu.memory_space<vmem>>, vector<1x8x1xf32>
      tpu.vector_store %arg4[%c0_21, %c0_22, %c0_23], %27 {strides = array<i32>} : memref<1x8x1xf32, #tpu.memory_space<vmem>>, vector<1x8x1xf32>,
      %cst_24 = arith.constant 0.000000e+00 : f32
      %29 = vector.broadcast %cst_24 : f32 to vector<1x8x1xf32>
      %c0_25 = arith.constant 0 : index
      %c0_26 = arith.constant 0 : index
      %c0_27 = arith.constant 0 : index
      %30 = vector.load %arg5[%c0_25, %c0_26, %c0_27] : memref<1x8x1xf32, #tpu.memory_space<vmem>>, vector<1x8x1xf32>
      tpu.vector_store %arg5[%c0_25, %c0_26, %c0_27], %29 {strides = array<i32>} : memref<1x8x1xf32, #tpu.memory_space<vmem>>, vector<1x8x1xf32>,
    } else {
    }
    %c0 = arith.constant 0 : index
    %c0_1 = arith.constant 0 : index
    %c0_2 = arith.constant 0 : index
    %3 = vector.load %arg2[%c0, %c0_1, %c0_2] : memref<4x8x256xf32, #tpu.memory_space<vmem>>, vector<4x8x256xf32>
    %c0_3 = arith.constant 0 : index
    %c0_4 = arith.constant 0 : index
    %4 = vector.load %arg3[%c0_3, %c0_4] : memref<8x1xf32, #tpu.memory_space<vmem>>, vector<8x1xf32>
    %5 = vector.shape_cast %4 : vector<8x1xf32> to vector<1x8x1xf32>
    %6 = vector.broadcast %5 : vector<1x8x1xf32> to vector<4x8x256xf32>
    %7 = arith.subf %3, %6 : vector<4x8x256xf32>
    %c0_5 = arith.constant 0 : index
    %c0_6 = arith.constant 0 : index
    %c0_7 = arith.constant 0 : index
    %8 = vector.load %arg4[%c0_5, %c0_6, %c0_7] : memref<1x8x1xf32, #tpu.memory_space<vmem>>, vector<1x8x1xf32>
    %9 = vector.shape_cast %8 : vector<1x8x1xf32> to vector<8x1xf32>
    %cst = arith.constant dense<0.000000e+00> : vector<8x256xf32>
    %10 = vector.multi_reduction <add>, %3, %cst [0] : vector<4x8x256xf32> to vector<8x256xf32>
    %cst_8 = arith.constant dense<0.000000e+00> : vector<8xf32>
    %11 = vector.multi_reduction <add>, %10, %cst_8 [1] : vector<8x256xf32> to vector<8xf32>
    %12 = vector.shape_cast %11 : vector<8xf32> to vector<8x1xf32>
    %13 = arith.addf %9, %12 : vector<8x1xf32>
    %c0_9 = arith.constant 0 : index
    %c0_10 = arith.constant 0 : index
    %c0_11 = arith.constant 0 : index
    %14 = vector.load %arg4[%c0_9, %c0_10, %c0_11] : memref<1x8x1xf32, #tpu.memory_space<vmem>>, vector<1x8x1xf32>
    %15 = vector.shape_cast %14 : vector<1x8x1xf32> to vector<8x1xf32>
    %16 = vector.shape_cast %13 : vector<8x1xf32> to vector<1x8x1xf32>
    tpu.vector_store %arg4[%c0_9, %c0_10, %c0_11], %16 {strides = array<i32>} : memref<1x8x1xf32, #tpu.memory_space<vmem>>, vector<1x8x1xf32>,
    %c0_12 = arith.constant 0 : index
    %c0_13 = arith.constant 0 : index
    %c0_14 = arith.constant 0 : index
    %17 = vector.load %arg5[%c0_12, %c0_13, %c0_14] : memref<1x8x1xf32, #tpu.memory_space<vmem>>, vector<1x8x1xf32>
    %18 = vector.shape_cast %17 : vector<1x8x1xf32> to vector<8x1xf32>
    %19 = arith.mulf %7, %7 : vector<4x8x256xf32>
    %cst_15 = arith.constant dense<0.000000e+00> : vector<8x256xf32>
    %20 = vector.multi_reduction <add>, %19, %cst_15 [0] : vector<4x8x256xf32> to vector<8x256xf32>
    %cst_16 = arith.constant dense<0.000000e+00> : vector<8xf32>
    %21 = vector.multi_reduction <add>, %20, %cst_16 [1] : vector<8x256xf32> to vector<8xf32>
    %22 = vector.shape_cast %21 : vector<8xf32> to vector<8x1xf32>
    %23 = arith.addf %18, %22 : vector<8x1xf32>
    %c0_17 = arith.constant 0 : index
    %c0_18 = arith.constant 0 : index
    %c0_19 = arith.constant 0 : index
    %24 = vector.load %arg5[%c0_17, %c0_18, %c0_19] : memref<1x8x1xf32, #tpu.memory_space<vmem>>, vector<1x8x1xf32>
    %25 = vector.shape_cast %24 : vector<1x8x1xf32> to vector<8x1xf32>
    %26 = vector.shape_cast %23 : vector<8x1xf32> to vector<1x8x1xf32>
    tpu.vector_store %arg5[%c0_17, %c0_18, %c0_19], %26 {strides = array<i32>} : memref<1x8x1xf32, #tpu.memory_space<vmem>>, vector<1x8x1xf32>,
    return
  }
  func.func @transform_0(%arg0: i32, %arg1: i32) -> (i32, i32, i32) {
    %c1_i32 = arith.constant 1 : i32
    %0 = arith.muli %arg0, %c1_i32 : i32
    %1 = arith.addi %0, %arg1 : i32
    %c0_i32 = arith.constant 0 : i32
    %c0_i32_0 = arith.constant 0 : i32
    %c0_i32_1 = arith.constant 0 : i32
    return %1, %c0_i32, %c0_i32_0 : i32, i32, i32
  }
  func.func @transform_1(%arg0: i32, %arg1: i32) -> (i32, i32) {
    %c0_i32 = arith.constant 0 : i32
    %c0_i32_0 = arith.constant 0 : i32
    %c0_i32_1 = arith.constant 0 : i32
    return %c0_i32, %c0_i32_0 : i32, i32
  }
  func.func @transform_2(%arg0: i32, %arg1: i32) -> (i32, i32, i32) {
    %c0_i32 = arith.constant 0 : i32
    %c0_i32_0 = arith.constant 0 : i32
    %c0_i32_1 = arith.constant 0 : i32
    return %arg0, %c0_i32, %c0_i32_0 : i32, i32, i32
  }
  func.func @transform_3(%arg0: i32, %arg1: i32) -> (i32, i32, i32) {
    %c0_i32 = arith.constant 0 : i32
    %c0_i32_0 = arith.constant 0 : i32
    %c0_i32_1 = arith.constant 0 : i32
    return %arg0, %c0_i32, %c0_i32_0 : i32, i32, i32
  }
}

module attributes {stable_mosaic.version = 11 : i64} {
  func.func @kernel(%arg0: i32, %arg1: memref<4x8x256xf32, #tpu.memory_space<vmem>>, %arg2: memref<16x1xf32, #tpu.memory_space<vmem>>, %arg3: memref<16x24xf32, #tpu.memory_space<vmem>>, %arg4: memref<16x1xf32, #tpu.memory_space<vmem>>, %arg5: memref<4x24x256xf32, #tpu.memory_space<vmem>>) attributes {dimension_semantics = [#tpu.dimension_semantics<parallel>], iteration_bounds = array<i64: 1>, scalar_prefetch = 0 : i64, scratch_operands = 0 : i64, tpu.core_type = #tpu.core_type<tc>, window_params = [{transform_indices = @transform_0, window_bounds = array<i64: 4, 8, 256>}, {pipeline_mode = #tpu.pipeline_mode<synchronous>, transform_indices = @transform_1, window_bounds = array<i64: 16, 1>}, {pipeline_mode = #tpu.pipeline_mode<synchronous>, transform_indices = @transform_2, window_bounds = array<i64: 16, 24>}, {pipeline_mode = #tpu.pipeline_mode<synchronous>, transform_indices = @transform_3, window_bounds = array<i64: 16, 1>}, {transform_indices = @transform_4, window_bounds = array<i64: 4, 24, 256>}]} {
    %c0 = arith.constant 0 : index
    %c0_0 = arith.constant 0 : index
    %0 = vector.load %arg2[%c0, %c0_0] : memref<16x1xf32, #tpu.memory_space<vmem>>, vector<8x1xf32>
    %c8 = arith.constant 8 : index
    %c0_1 = arith.constant 0 : index
    %1 = vector.load %arg2[%c8, %c0_1] : memref<16x1xf32, #tpu.memory_space<vmem>>, vector<8x1xf32>
    %c0_2 = arith.constant 0 : index
    %c0_3 = arith.constant 0 : index
    %2 = vector.load %arg3[%c0_2, %c0_3] : memref<16x24xf32, #tpu.memory_space<vmem>>, vector<16x24xf32>
    %c0_4 = arith.constant 0 : index
    %c0_5 = arith.constant 0 : index
    %3 = vector.load %arg4[%c0_4, %c0_5] : memref<16x1xf32, #tpu.memory_space<vmem>>, vector<16x1xf32>
    %4 = tpu.iota {dimensions = array<i32: 1>} : vector<8x256xi32>
    %c0_i32 = arith.constant 0 : i32
    %5 = vector.broadcast %c0_i32 : i32 to vector<8x256xi32>
    %6 = arith.cmpi eq, %4, %5 : vector<8x256xi32>
    %c255_i32 = arith.constant 255 : i32
    %7 = vector.broadcast %c255_i32 : i32 to vector<8x256xi32>
    %8 = arith.cmpi eq, %4, %7 : vector<8x256xi32>
    %c0_6 = arith.constant 0 : index
    %c0_7 = arith.constant 0 : index
    %c0_8 = arith.constant 0 : index
    %9 = vector.load %arg1[%c0_6, %c0_7, %c0_8] : memref<4x8x256xf32, #tpu.memory_space<vmem>>, vector<1x8x256xf32>
    %10 = vector.shape_cast %9 : vector<1x8x256xf32> to vector<8x256xf32>
    %c0_9 = arith.constant 0 : index
    %c0_10 = arith.constant 0 : index
    %c0_11 = arith.constant 0 : index
    %11 = vector.load %arg5[%c0_9, %c0_10, %c0_11] : memref<4x24x256xf32, #tpu.memory_space<vmem>>, vector<1x8x256xf32>
    %12 = vector.shape_cast %11 : vector<1x8x256xf32> to vector<8x256xf32>
    %13 = vector.shape_cast %10 : vector<8x256xf32> to vector<1x8x256xf32>
    tpu.vector_store %arg5[%c0_9, %c0_10, %c0_11], %13 {strides = array<i32>} : memref<4x24x256xf32, #tpu.memory_space<vmem>>, vector<1x8x256xf32>,
    %14 = vector.broadcast %0 : vector<8x1xf32> to vector<8x256xf32>
    %15 = arith.mulf %10, %14 : vector<8x256xf32>
    %16 = vector.broadcast %1 : vector<8x1xf32> to vector<8x256xf32>
    %17 = arith.addf %15, %16 : vector<8x256xf32>
    %cst = arith.constant 5.000000e-01 : f32
    %18 = vector.broadcast %cst : f32 to vector<8x256xf32>
    %19 = arith.mulf %18, %17 : vector<8x256xf32>
    %cst_12 = arith.constant 0.707106769 : f32
    %20 = vector.broadcast %cst_12 : f32 to vector<8x256xf32>
    %21 = arith.mulf %17, %20 : vector<8x256xf32>
    %22 = math.erf %21 : vector<8x256xf32>
    %cst_13 = arith.constant 1.000000e+00 : f32
    %23 = vector.broadcast %cst_13 : f32 to vector<8x256xf32>
    %24 = arith.addf %23, %22 : vector<8x256xf32>
    %25 = arith.mulf %19, %24 : vector<8x256xf32>
    %c1_i32 = arith.constant 1 : i32
    %26 = tpu.dynamic_rotate %25 by %c1_i32 dim 1 : vector<8x256xf32>, i32 -> vector<8x256xf32>
    %cst_14 = arith.constant 0.000000e+00 : f32
    %27 = vector.broadcast %cst_14 : f32 to vector<8x256xf32>
    %28 = arith.select %6, %27, %26 : vector<8x256xi1>, vector<8x256xf32>
    %c255_i32_15 = arith.constant 255 : i32
    %29 = tpu.dynamic_rotate %25 by %c255_i32_15 dim 1 : vector<8x256xf32>, i32 -> vector<8x256xf32>
    %cst_16 = arith.constant 0.000000e+00 : f32
    %30 = vector.broadcast %cst_16 : f32 to vector<8x256xf32>
    %31 = arith.select %8, %30, %29 : vector<8x256xi1>, vector<8x256xf32>
    %32 = tpu.concatenate %28, %25, %31 in 0 : vector<8x256xf32>, vector<8x256xf32>, vector<8x256xf32> -> vector<24x256xf32>
    %cst_17 = arith.constant dense<0.000000e+00> : vector<16x256xf32>
    %33 = tpu.matmul %2, %32, %cst_17 {dimension_numbers = #tpu.dot_dimension_numbers<[1], [0], [0], [1], [0, 0, 1, 1], [], []>} : vector<16x24xf32>, vector<24x256xf32>, vector<16x256xf32> -> vector<16x256xf32>
    %34 = vector.broadcast %3 : vector<16x1xf32> to vector<16x256xf32>
    %35 = arith.addf %33, %34 : vector<16x256xf32>
    %c0_18 = arith.constant 0 : index
    %c8_19 = arith.constant 8 : index
    %c0_20 = arith.constant 0 : index
    %36 = vector.load %arg5[%c0_18, %c8_19, %c0_20] : memref<4x24x256xf32, #tpu.memory_space<vmem>>, vector<1x16x256xf32>
    %37 = vector.shape_cast %36 : vector<1x16x256xf32> to vector<16x256xf32>
    %38 = vector.shape_cast %35 : vector<16x256xf32> to vector<1x16x256xf32>
    tpu.vector_store %arg5[%c0_18, %c8_19, %c0_20], %38 {strides = array<i32>} : memref<4x24x256xf32, #tpu.memory_space<vmem>>, vector<1x16x256xf32>,
    %c1 = arith.constant 1 : index
    %c0_21 = arith.constant 0 : index
    %c0_22 = arith.constant 0 : index
    %39 = vector.load %arg1[%c1, %c0_21, %c0_22] : memref<4x8x256xf32, #tpu.memory_space<vmem>>, vector<1x8x256xf32>
    %40 = vector.shape_cast %39 : vector<1x8x256xf32> to vector<8x256xf32>
    %c1_23 = arith.constant 1 : index
    %c0_24 = arith.constant 0 : index
    %c0_25 = arith.constant 0 : index
    %41 = vector.load %arg5[%c1_23, %c0_24, %c0_25] : memref<4x24x256xf32, #tpu.memory_space<vmem>>, vector<1x8x256xf32>
    %42 = vector.shape_cast %41 : vector<1x8x256xf32> to vector<8x256xf32>
    %43 = vector.shape_cast %40 : vector<8x256xf32> to vector<1x8x256xf32>
    tpu.vector_store %arg5[%c1_23, %c0_24, %c0_25], %43 {strides = array<i32>} : memref<4x24x256xf32, #tpu.memory_space<vmem>>, vector<1x8x256xf32>,
    %44 = vector.broadcast %0 : vector<8x1xf32> to vector<8x256xf32>
    %45 = arith.mulf %40, %44 : vector<8x256xf32>
    %46 = vector.broadcast %1 : vector<8x1xf32> to vector<8x256xf32>
    %47 = arith.addf %45, %46 : vector<8x256xf32>
    %cst_26 = arith.constant 5.000000e-01 : f32
    %48 = vector.broadcast %cst_26 : f32 to vector<8x256xf32>
    %49 = arith.mulf %48, %47 : vector<8x256xf32>
    %cst_27 = arith.constant 0.707106769 : f32
    %50 = vector.broadcast %cst_27 : f32 to vector<8x256xf32>
    %51 = arith.mulf %47, %50 : vector<8x256xf32>
    %52 = math.erf %51 : vector<8x256xf32>
    %cst_28 = arith.constant 1.000000e+00 : f32
    %53 = vector.broadcast %cst_28 : f32 to vector<8x256xf32>
    %54 = arith.addf %53, %52 : vector<8x256xf32>
    %55 = arith.mulf %49, %54 : vector<8x256xf32>
    %c1_i32_29 = arith.constant 1 : i32
    %56 = tpu.dynamic_rotate %55 by %c1_i32_29 dim 1 : vector<8x256xf32>, i32 -> vector<8x256xf32>
    %cst_30 = arith.constant 0.000000e+00 : f32
    %57 = vector.broadcast %cst_30 : f32 to vector<8x256xf32>
    %58 = arith.select %6, %57, %56 : vector<8x256xi1>, vector<8x256xf32>
    %c255_i32_31 = arith.constant 255 : i32
    %59 = tpu.dynamic_rotate %55 by %c255_i32_31 dim 1 : vector<8x256xf32>, i32 -> vector<8x256xf32>
    %cst_32 = arith.constant 0.000000e+00 : f32
    %60 = vector.broadcast %cst_32 : f32 to vector<8x256xf32>
    %61 = arith.select %8, %60, %59 : vector<8x256xi1>, vector<8x256xf32>
    %62 = tpu.concatenate %58, %55, %61 in 0 : vector<8x256xf32>, vector<8x256xf32>, vector<8x256xf32> -> vector<24x256xf32>
    %cst_33 = arith.constant dense<0.000000e+00> : vector<16x256xf32>
    %63 = tpu.matmul %2, %62, %cst_33 {dimension_numbers = #tpu.dot_dimension_numbers<[1], [0], [0], [1], [0, 0, 1, 1], [], []>} : vector<16x24xf32>, vector<24x256xf32>, vector<16x256xf32> -> vector<16x256xf32>
    %64 = vector.broadcast %3 : vector<16x1xf32> to vector<16x256xf32>
    %65 = arith.addf %63, %64 : vector<16x256xf32>
    %c1_34 = arith.constant 1 : index
    %c8_35 = arith.constant 8 : index
    %c0_36 = arith.constant 0 : index
    %66 = vector.load %arg5[%c1_34, %c8_35, %c0_36] : memref<4x24x256xf32, #tpu.memory_space<vmem>>, vector<1x16x256xf32>
    %67 = vector.shape_cast %66 : vector<1x16x256xf32> to vector<16x256xf32>
    %68 = vector.shape_cast %65 : vector<16x256xf32> to vector<1x16x256xf32>
    tpu.vector_store %arg5[%c1_34, %c8_35, %c0_36], %68 {strides = array<i32>} : memref<4x24x256xf32, #tpu.memory_space<vmem>>, vector<1x16x256xf32>,
    %c2 = arith.constant 2 : index
    %c0_37 = arith.constant 0 : index
    %c0_38 = arith.constant 0 : index
    %69 = vector.load %arg1[%c2, %c0_37, %c0_38] : memref<4x8x256xf32, #tpu.memory_space<vmem>>, vector<1x8x256xf32>
    %70 = vector.shape_cast %69 : vector<1x8x256xf32> to vector<8x256xf32>
    %c2_39 = arith.constant 2 : index
    %c0_40 = arith.constant 0 : index
    %c0_41 = arith.constant 0 : index
    %71 = vector.load %arg5[%c2_39, %c0_40, %c0_41] : memref<4x24x256xf32, #tpu.memory_space<vmem>>, vector<1x8x256xf32>
    %72 = vector.shape_cast %71 : vector<1x8x256xf32> to vector<8x256xf32>
    %73 = vector.shape_cast %70 : vector<8x256xf32> to vector<1x8x256xf32>
    tpu.vector_store %arg5[%c2_39, %c0_40, %c0_41], %73 {strides = array<i32>} : memref<4x24x256xf32, #tpu.memory_space<vmem>>, vector<1x8x256xf32>,
    %74 = vector.broadcast %0 : vector<8x1xf32> to vector<8x256xf32>
    %75 = arith.mulf %70, %74 : vector<8x256xf32>
    %76 = vector.broadcast %1 : vector<8x1xf32> to vector<8x256xf32>
    %77 = arith.addf %75, %76 : vector<8x256xf32>
    %cst_42 = arith.constant 5.000000e-01 : f32
    %78 = vector.broadcast %cst_42 : f32 to vector<8x256xf32>
    %79 = arith.mulf %78, %77 : vector<8x256xf32>
    %cst_43 = arith.constant 0.707106769 : f32
    %80 = vector.broadcast %cst_43 : f32 to vector<8x256xf32>
    %81 = arith.mulf %77, %80 : vector<8x256xf32>
    %82 = math.erf %81 : vector<8x256xf32>
    %cst_44 = arith.constant 1.000000e+00 : f32
    %83 = vector.broadcast %cst_44 : f32 to vector<8x256xf32>
    %84 = arith.addf %83, %82 : vector<8x256xf32>
    %85 = arith.mulf %79, %84 : vector<8x256xf32>
    %c1_i32_45 = arith.constant 1 : i32
    %86 = tpu.dynamic_rotate %85 by %c1_i32_45 dim 1 : vector<8x256xf32>, i32 -> vector<8x256xf32>
    %cst_46 = arith.constant 0.000000e+00 : f32
    %87 = vector.broadcast %cst_46 : f32 to vector<8x256xf32>
    %88 = arith.select %6, %87, %86 : vector<8x256xi1>, vector<8x256xf32>
    %c255_i32_47 = arith.constant 255 : i32
    %89 = tpu.dynamic_rotate %85 by %c255_i32_47 dim 1 : vector<8x256xf32>, i32 -> vector<8x256xf32>
    %cst_48 = arith.constant 0.000000e+00 : f32
    %90 = vector.broadcast %cst_48 : f32 to vector<8x256xf32>
    %91 = arith.select %8, %90, %89 : vector<8x256xi1>, vector<8x256xf32>
    %92 = tpu.concatenate %88, %85, %91 in 0 : vector<8x256xf32>, vector<8x256xf32>, vector<8x256xf32> -> vector<24x256xf32>
    %cst_49 = arith.constant dense<0.000000e+00> : vector<16x256xf32>
    %93 = tpu.matmul %2, %92, %cst_49 {dimension_numbers = #tpu.dot_dimension_numbers<[1], [0], [0], [1], [0, 0, 1, 1], [], []>} : vector<16x24xf32>, vector<24x256xf32>, vector<16x256xf32> -> vector<16x256xf32>
    %94 = vector.broadcast %3 : vector<16x1xf32> to vector<16x256xf32>
    %95 = arith.addf %93, %94 : vector<16x256xf32>
    %c2_50 = arith.constant 2 : index
    %c8_51 = arith.constant 8 : index
    %c0_52 = arith.constant 0 : index
    %96 = vector.load %arg5[%c2_50, %c8_51, %c0_52] : memref<4x24x256xf32, #tpu.memory_space<vmem>>, vector<1x16x256xf32>
    %97 = vector.shape_cast %96 : vector<1x16x256xf32> to vector<16x256xf32>
    %98 = vector.shape_cast %95 : vector<16x256xf32> to vector<1x16x256xf32>
    tpu.vector_store %arg5[%c2_50, %c8_51, %c0_52], %98 {strides = array<i32>} : memref<4x24x256xf32, #tpu.memory_space<vmem>>, vector<1x16x256xf32>,
    %c3 = arith.constant 3 : index
    %c0_53 = arith.constant 0 : index
    %c0_54 = arith.constant 0 : index
    %99 = vector.load %arg1[%c3, %c0_53, %c0_54] : memref<4x8x256xf32, #tpu.memory_space<vmem>>, vector<1x8x256xf32>
    %100 = vector.shape_cast %99 : vector<1x8x256xf32> to vector<8x256xf32>
    %c3_55 = arith.constant 3 : index
    %c0_56 = arith.constant 0 : index
    %c0_57 = arith.constant 0 : index
    %101 = vector.load %arg5[%c3_55, %c0_56, %c0_57] : memref<4x24x256xf32, #tpu.memory_space<vmem>>, vector<1x8x256xf32>
    %102 = vector.shape_cast %101 : vector<1x8x256xf32> to vector<8x256xf32>
    %103 = vector.shape_cast %100 : vector<8x256xf32> to vector<1x8x256xf32>
    tpu.vector_store %arg5[%c3_55, %c0_56, %c0_57], %103 {strides = array<i32>} : memref<4x24x256xf32, #tpu.memory_space<vmem>>, vector<1x8x256xf32>,
    %104 = vector.broadcast %0 : vector<8x1xf32> to vector<8x256xf32>
    %105 = arith.mulf %100, %104 : vector<8x256xf32>
    %106 = vector.broadcast %1 : vector<8x1xf32> to vector<8x256xf32>
    %107 = arith.addf %105, %106 : vector<8x256xf32>
    %cst_58 = arith.constant 5.000000e-01 : f32
    %108 = vector.broadcast %cst_58 : f32 to vector<8x256xf32>
    %109 = arith.mulf %108, %107 : vector<8x256xf32>
    %cst_59 = arith.constant 0.707106769 : f32
    %110 = vector.broadcast %cst_59 : f32 to vector<8x256xf32>
    %111 = arith.mulf %107, %110 : vector<8x256xf32>
    %112 = math.erf %111 : vector<8x256xf32>
    %cst_60 = arith.constant 1.000000e+00 : f32
    %113 = vector.broadcast %cst_60 : f32 to vector<8x256xf32>
    %114 = arith.addf %113, %112 : vector<8x256xf32>
    %115 = arith.mulf %109, %114 : vector<8x256xf32>
    %c1_i32_61 = arith.constant 1 : i32
    %116 = tpu.dynamic_rotate %115 by %c1_i32_61 dim 1 : vector<8x256xf32>, i32 -> vector<8x256xf32>
    %cst_62 = arith.constant 0.000000e+00 : f32
    %117 = vector.broadcast %cst_62 : f32 to vector<8x256xf32>
    %118 = arith.select %6, %117, %116 : vector<8x256xi1>, vector<8x256xf32>
    %c255_i32_63 = arith.constant 255 : i32
    %119 = tpu.dynamic_rotate %115 by %c255_i32_63 dim 1 : vector<8x256xf32>, i32 -> vector<8x256xf32>
    %cst_64 = arith.constant 0.000000e+00 : f32
    %120 = vector.broadcast %cst_64 : f32 to vector<8x256xf32>
    %121 = arith.select %8, %120, %119 : vector<8x256xi1>, vector<8x256xf32>
    %122 = tpu.concatenate %118, %115, %121 in 0 : vector<8x256xf32>, vector<8x256xf32>, vector<8x256xf32> -> vector<24x256xf32>
    %cst_65 = arith.constant dense<0.000000e+00> : vector<16x256xf32>
    %123 = tpu.matmul %2, %122, %cst_65 {dimension_numbers = #tpu.dot_dimension_numbers<[1], [0], [0], [1], [0, 0, 1, 1], [], []>} : vector<16x24xf32>, vector<24x256xf32>, vector<16x256xf32> -> vector<16x256xf32>
    %124 = vector.broadcast %3 : vector<16x1xf32> to vector<16x256xf32>
    %125 = arith.addf %123, %124 : vector<16x256xf32>
    %c3_66 = arith.constant 3 : index
    %c8_67 = arith.constant 8 : index
    %c0_68 = arith.constant 0 : index
    %126 = vector.load %arg5[%c3_66, %c8_67, %c0_68] : memref<4x24x256xf32, #tpu.memory_space<vmem>>, vector<1x16x256xf32>
    %127 = vector.shape_cast %126 : vector<1x16x256xf32> to vector<16x256xf32>
    %128 = vector.shape_cast %125 : vector<16x256xf32> to vector<1x16x256xf32>
    tpu.vector_store %arg5[%c3_66, %c8_67, %c0_68], %128 {strides = array<i32>} : memref<4x24x256xf32, #tpu.memory_space<vmem>>, vector<1x16x256xf32>,
    return
  }
  func.func @transform_0(%arg0: i32) -> (i32, i32, i32) {
    %c0_i32 = arith.constant 0 : i32
    %c0_i32_0 = arith.constant 0 : i32
    %c0_i32_1 = arith.constant 0 : i32
    return %arg0, %c0_i32, %c0_i32_0 : i32, i32, i32
  }
  func.func @transform_1(%arg0: i32) -> (i32, i32) {
    %c0_i32 = arith.constant 0 : i32
    %c0_i32_0 = arith.constant 0 : i32
    %c0_i32_1 = arith.constant 0 : i32
    return %c0_i32, %c0_i32_0 : i32, i32
  }
  func.func @transform_2(%arg0: i32) -> (i32, i32) {
    %c0_i32 = arith.constant 0 : i32
    %c0_i32_0 = arith.constant 0 : i32
    %c0_i32_1 = arith.constant 0 : i32
    return %c0_i32, %c0_i32_0 : i32, i32
  }
  func.func @transform_3(%arg0: i32) -> (i32, i32) {
    %c0_i32 = arith.constant 0 : i32
    %c0_i32_0 = arith.constant 0 : i32
    %c0_i32_1 = arith.constant 0 : i32
    return %c0_i32, %c0_i32_0 : i32, i32
  }
  func.func @transform_4(%arg0: i32) -> (i32, i32, i32) {
    %c0_i32 = arith.constant 0 : i32
    %c0_i32_0 = arith.constant 0 : i32
    %c0_i32_1 = arith.constant 0 : i32
    return %arg0, %c0_i32, %c0_i32_0 : i32, i32, i32
  }
}

</mosaic_0001>

<bundles_post_ra>
// kernel: dense_layer.2
= control target key start
LH: loop header
LB: loop body
LE: loop exit
PB: predicated region body
PF: predicated region fallthrough
CT: control target
= control target key end

     0   :  { %9 = vsyncpa [#allocation3], 0  ;;  %s133_s12 = smov [#allocation2]   ;;  %s186_s0 = inlined_call_operand.hbm [shape: f32[4,8,256], index: 0, kind: input, shape index: {}]   ;;  %s187_s1 = inlined_call_operand.vmem [shape: f32[8,1], index: 1, kind: input, shape index: {}]   ;;  %s188_s2 = inlined_call_operand.vmem [shape: f32[1,8,1], index: 2, kind: output, shape index: {0}]   ;;  %s189_s3 = inlined_call_operand.vmem [shape: f32[1,8,1], index: 3, kind: output, shape index: {1}]  }
   0x1   :  { %s20_s13 = sshll.u32 %s133_s12, 4  ;;  %s21_s13 = int_to_ptr.vmem [resolvable:$true] %s20_s13 }
   0x2   :  { %s119_s14 = scalar_lea.vmem %s21_s13, 1024  ;;  %p124_p1 = scmp.lt.s32.totalorder %s21_s13, %s21_s13 }
   0x3   :  { %p120_p0 = scmp.ne.s32.totalorder %s21_s13, %s119_s14  ;;  %p125_p2 = scmp.lt.s32.totalorder %s119_s14, %s119_s14 }
   0x5   :  { %p126_p3 = por %p125_p2, %p124_p1 }
   0x7   :  { %p127_p4 = pnand %p126_p3, %p120_p0 }
   0x9   :  { %130 = shalt.err (!%p127_p4)
}
   0xa   :  { %s134_s15 = smov 256   ;;  %s135_s16 = smov 16  }
   0xb   :  { %26 = dma.hbm_to_vmem [thread:$0]  %s186_s0, 1024, %s21_s13, [#allocation3], %s134_s15, %s134_s15, %s135_s16  }
   0xc   :  { %131 = dma.done.wait [#allocation3], 1024  }
   0xd   :  { %132 = vsyncadd [#allocation3], 4294966272  ;;  %v136_v0 = vmov 0   ;;  %v49_v1 = vld [vmem:[%s187_s1] sm:$0xff]  ;;  %vm38_vm0 = vcmask 7168   ;;  %v137_v2 = vmov 0.0  }
   0xe   :  { %110 = vset.pattern.permute.xlu0 %v136_v0  ;;  %39 = vst.msk [vmem:[%s188_s2] sm:$0xff] %vm38_vm0, %v137_v2  ;;  %40 = vst.msk [vmem:[%s189_s3] sm:$0xff] %vm38_vm0, %v137_v2  ;;  %v41_v3 = vld [vmem:[#allocation2] sm:$0xff]  ;;  %v42_v4 = vld [vmem:[#allocation2 + $0x8] sm:$0xff] }
   0xf   :  { %52 = vperm.xlu0 %110, %v49_v1   ;;  %v43_v5 = vld [vmem:[#allocation2 + $0x10] sm:$0xff]  ;;  %v44_v6 = vld [vmem:[#allocation2 + $0x18] sm:$0xff]  ;;  %v45_v9 = vld [vmem:[#allocation2 + $0x20] sm:$0xff] }
  0x10   :  { %v64_v7 = vadd.f32 %v43_v5, %v41_v3  ;;  %v67_v8 = vadd.f32 %v44_v6, %v42_v4  ;;  %v46_v10 = vld [vmem:[#allocation2 + $0x28] sm:$0xff]  ;;  %v47_v13 = vld [vmem:[#allocation2 + $0x30] sm:$0xff]  ;;  %v48_v14 = vld [vmem:[#allocation2 + $0x38] sm:$0xff] }
  0x12   :  { %v65_v11 = vadd.f32 %v64_v7, %v45_v9  ;;  %v68_v12 = vadd.f32 %v67_v8, %v46_v10 }
  0x14   :  { %v66_v15 = vadd.f32 %v65_v11, %v47_v13  ;;  %v69_v16 = vadd.f32 %v68_v12, %v48_v14 }
  0x15   :  { %v63_v42 = vld [vmem:[%s188_s2] sm:$0xff] }
  0x16   :  { %v70_v17 = vadd.f32 %v69_v16, %v66_v15  ;;  %v76_v45 = vld [vmem:[%s189_s3] sm:$0xff] }
  0x2e   :  { %71 = vadd.xlane.f32.xlu0 %v70_v17 }
  0x8a   :  { %v53_v18 = vpop.permute.xlu0 %52 }
  0x8b   :  { %v55_v19 = vsub.f32 %v41_v3, %v53_v18  ;;  %v56_v20 = vsub.f32 %v42_v4, %v53_v18  ;;  %v57_v21 = vsub.f32 %v43_v5, %v53_v18  ;;  %v58_v22 = vsub.f32 %v44_v6, %v53_v18 }
  0x8c   :  { %v59_v23 = vsub.f32 %v45_v9, %v53_v18  ;;  %v60_v24 = vsub.f32 %v46_v10, %v53_v18  ;;  %v61_v25 = vsub.f32 %v47_v13, %v53_v18  ;;  %v62_v26 = vsub.f32 %v48_v14, %v53_v18 }
  0x8d   :  { %v77_v27 = vmul.f32 %v55_v19, %v55_v19  ;;  %v78_v28 = vmul.f32 %v56_v20, %v56_v20  ;;  %v79_v29 = vmul.f32 %v57_v21, %v57_v21  ;;  %v80_v30 = vmul.f32 %v58_v22, %v58_v22 }
  0x8e   :  { %v81_v31 = vmul.f32 %v59_v23, %v59_v23  ;;  %v82_v32 = vmul.f32 %v60_v24, %v60_v24  ;;  %v83_v35 = vmul.f32 %v61_v25, %v61_v25  ;;  %v84_v36 = vmul.f32 %v62_v26, %v62_v26 }
  0x8f   :  { %v85_v33 = vadd.f32 %v79_v29, %v77_v27  ;;  %v88_v34 = vadd.f32 %v80_v30, %v78_v28 }
  0x91   :  { %v86_v37 = vadd.f32 %v85_v33, %v81_v31  ;;  %v89_v38 = vadd.f32 %v88_v34, %v82_v32 }
  0x93   :  { %v87_v39 = vadd.f32 %v86_v37, %v83_v35  ;;  %v90_v40 = vadd.f32 %v89_v38, %v84_v36 }
  0x95   :  { %v91_v41 = vadd.f32 %v90_v40, %v87_v39 }
  0x97   :  { %92 = vadd.xlane.f32.xlu1 %v91_v41 }
  0xb7   :  { %v72_v43 = vpop.xlane.xlu0 %71 }
  0xb8   :  { %v73_v44 = vadd.f32 %v72_v43, %v63_v42 }
  0xba   :  { %75 = vst.msk [vmem:[%s188_s2] sm:$0xff] %vm38_vm0, %v73_v44 }
 0x120   :  { %v93_v46 = vpop.xlane.xlu1 %92 }
 0x121   :  { %v94_v47 = vadd.f32 %v93_v46, %v76_v45 }
 0x123   :  { %95 = vst.msk [vmem:[%s189_s3] sm:$0xff] %vm38_vm0, %v94_v47 }
 0x124   :  { %104 = vsyncpa [#allocation3], 1 }

// kernel: dense_layer.3
= control target key start
LH: loop header
LB: loop body
LE: loop exit
PB: predicated region body
PF: predicated region fallthrough
CT: control target
= control target key end

     0   :  { %v621_v2 = vmov 0   ;;  %s810_s0 = inlined_call_operand.vmem [shape: f32[4,8,256], index: 0, kind: input, shape index: {}]   ;;  %s811_s1 = inlined_call_operand.vmem [shape: f32[16,1], index: 1, kind: input, shape index: {}]   ;;  %s812_s2 = inlined_call_operand.vmem [shape: f32[16,24], index: 2, kind: input, shape index: {}]   ;;  %s813_s3 = inlined_call_operand.vmem [shape: f32[16,1], index: 3, kind: input, shape index: {}]   ;;  %s814_s4 = inlined_call_operand.hbm [shape: f32[4,24,256], index: 4, kind: output, shape index: {}]  }
   0x1   :  { %v18_v0 = vld [vmem:[%s811_s1] sm:$0xff]  ;;  %581 = vset.pattern.permute.xlu0 %v621_v2  ;;  %v548_v3 = vld [vmem:[%s810_s0 + $0x10] sm:$0xff]  ;;  %v32_v4 = vld [vmem:[%s810_s0 + $0x8] sm:$0xff]  ;;  %582 = vset.pattern.permute.xlu1 %v621_v2 }
   0x2   :  { %v31_v1 = vld [vmem:[%s810_s0] sm:$0xff]  ;;  %v549_v5 = vld [vmem:[%s810_s0 + $0x18] sm:$0xff]  ;;  %37 = vperm.xlu0 %581, %v18_v0   ;;  %179 = vst [vmem:[#allocation2 + $0x30] sm:$0xff] %v548_v3  ;;  %34 = vst [vmem:[#allocation2 + $0x8] sm:$0xff] %v32_v4 }
   0x3   :  { %33 = vst [vmem:[#allocation2] sm:$0xff] %v31_v1  ;;  %180 = vst [vmem:[#allocation2 + $0x38] sm:$0xff] %v549_v5  ;;  %v556_v6 = vld [vmem:[%s810_s0 + $0x20] sm:$0xff]  ;;  %v564_v7 = vld [vmem:[%s810_s0 + $0x30] sm:$0xff] }
   0x4   :  { %v557_v8 = vld [vmem:[%s810_s0 + $0x28] sm:$0xff]  ;;  %296 = vst [vmem:[#allocation2 + $0x60] sm:$0xff] %v556_v6  ;;  %413 = vst [vmem:[#allocation2 + $0x90] sm:$0xff] %v564_v7  ;;  %v565_v10 = vld [vmem:[%s810_s0 + $0x38] sm:$0xff] }
   0x5   :  { %v19_v9 = vld [vmem:[%s811_s1 + $0x8] sm:$0xff]  ;;  %297 = vst [vmem:[#allocation2 + $0x68] sm:$0xff] %v557_v8 }
   0x6   :  { %9 = vsyncpa [#allocation3], 0  ;;  %414 = vst [vmem:[#allocation2 + $0x98] sm:$0xff] %v565_v10  ;;  %44 = vperm.xlu0 %581, %v19_v9   ;;  %s622_s0 = smov 127   ;;  %v623_v51 = vmov 0.0   ;;  %s624_s1 = smov 1  }
   0x7   :  { %158 = vmatprep.mubr.f32.mxu0 %v623_v51  ;;  %275 = vmatprep.mubr.f32.mxu1 %v623_v51  ;;  %vm87_vm4 = vcmask 195584  }
  0x7d   :  { %v38_v11 = vpop.permute.xlu0 %37 }
  0x7e   :  { %v40_v12 = vmul.f32 %v38_v11, %v31_v1  ;;  %v181_v13 = vmul.f32 %v548_v3, %v38_v11  ;;  %v41_v14 = vmul.f32 %v38_v11, %v32_v4  ;;  %v182_v15 = vmul.f32 %v549_v5, %v38_v11 }
  0x7f   :  { %v298_v24 = vmul.f32 %v556_v6, %v38_v11  ;;  %v415_v27 = vmul.f32 %v564_v7, %v38_v11  ;;  %v299_v30 = vmul.f32 %v557_v8, %v38_v11  ;;  %v416_v33 = vmul.f32 %v565_v10, %v38_v11  ;;  %v22_v6 = vld [vmem:[%s813_s3] sm:$0xff]  ;;  %v23_v7 = vld [vmem:[%s813_s3 + $0x8] sm:$0xff] }
  0x80   :  { %v24_v8 = vlaneseq }
  0x81   :  { %v45_v16 = vpop.permute.xlu0 %44 }
  0x82   :  { %v47_v17 = vadd.f32 %v45_v16, %v40_v12  ;;  %v183_v18 = vadd.f32 %v181_v13, %v45_v16  ;;  %v48_v19 = vadd.f32 %v45_v16, %v41_v14  ;;  %v184_v20 = vadd.f32 %v182_v15, %v45_v16 }
  0x83   :  { %v300_v26 = vadd.f32 %v298_v24, %v45_v16  ;;  %v417_v29 = vadd.f32 %v415_v27, %v45_v16  ;;  %v301_v31 = vadd.f32 %v299_v30, %v45_v16  ;;  %v418_v35 = vadd.f32 %v416_v33, %v45_v16  ;;  %v20_v24 = vld [vmem:[%s812_s2] sm:$0xff] }
  0x84   :  { %v51_v21 = vmul.f32 0.70710677, %v47_v17  ;;  %v187_v22 = vmul.f32 0.70710677, %v183_v18  ;;  %v52_v23 = vmul.f32 0.70710677, %v48_v19 }
  0x85   :  { %v188_v25 = vmul.f32 0.70710677, %v184_v20  ;;  %v304_v28 = vmul.f32 0.70710677, %v300_v26  ;;  %v421_v32 = vmul.f32 0.70710677, %v417_v29 }
  0x86   :  { %583 = verf.f32 %v51_v21  ;;  %v305_v34 = vmul.f32 0.70710677, %v301_v31  ;;  %v49_v38 = vmul.f32 0.5, %v47_v17  ;;  %v185_v41 = vmul.f32 0.5, %v183_v18 }
  0x87   :  { %585 = verf.f32 %v187_v22  ;;  %v422_v45 = vmul.f32 0.70710677, %v418_v35  ;;  %v50_v48 = vmul.f32 0.5, %v48_v19  ;;  %v186_v53 = vmul.f32 0.5, %v184_v20 }
  0x88   :  { %587 = verf.f32 %v52_v23  ;;  %v302_v57 = vmul.f32 0.5, %v300_v26  ;;  %v419_v61 = vmul.f32 0.5, %v417_v29  ;;  %v303_v1 = vmul.f32 0.5, %v301_v31  ;;  %v21_v29 = vld [vmem:[%s812_s2 + $0x8] sm:$0xff]  ;;  %s625_s2 = smov [#allocation2]  }
  0x89   :  { %589 = verf.f32 %v188_v25  ;;  %v420_v4 = vmul.f32 0.5, %v418_v35  ;;  %v731_v9 = vand.u32 127, %v24_v8  ;;  %s531_s16 = sshll.u32 %s625_s2, 4  ;;  %s532_s16 = int_to_ptr.vmem [resolvable:$true] %s531_s16 }
  0x8a   :  { %591 = verf.f32 %v304_v28  ;;  %s599_s17 = scalar_lea.vmem %s532_s16, 3072  ;;  %p604_p1 = scmp.lt.s32.totalorder %s532_s16, %s532_s16 }
  0x8b   :  { %593 = verf.f32 %v421_v32  ;;  %v26_v10 = vadd.s32 128, %v731_v9  ;;  %vm72_vm0 = vcmp.lt.s32.totalorder %v731_v9, 127  ;;  %vm63_vm2 = vcmp.lt.s32.totalorder %v731_v9, 1  ;;  %p600_p0 = scmp.ne.s32.totalorder %s532_s16, %s599_s17  ;;  %p605_p2 = scmp.lt.s32.totalorder %s599_s17, %s599_s17 }
  0x8c   :  { %595 = verf.f32 %v305_v34  ;;  %vm573_vm3 = vcmp.ne.s32.totalorder %v731_v9, 0 }
  0x8d   :  { %597 = verf.f32 %v422_v45  ;;  %vm572_vm1 = vcmp.ne.s32.totalorder %v26_v10, 255  ;;  %p606_p3 = por %p605_p2, %p604_p1 }
  0x8f   :  { %p607_p4 = pnand %p606_p3, %p600_p0 }
  0x93   :  { %v584_v36 = vpop.eup %583 }
  0x94   :  { %v586_v37 = vpop.eup %585  ;;  %v55_v39 = vadd.f32 1.0, %v584_v36 }
  0x95   :  { %v588_v40 = vpop.eup %587  ;;  %v191_v42 = vadd.f32 1.0, %v586_v37 }
  0x96   :  { %v683_v43 = vmul.f32 %v55_v39, %v49_v38  ;;  %v56_v44 = vadd.f32 1.0, %v588_v40  ;;  %v590_v46 = vpop.eup %589 }
  0x97   :  { %v685_v47 = vmul.f32 %v191_v42, %v185_v41  ;;  %v192_v50 = vadd.f32 1.0, %v590_v46  ;;  %v592_v52 = vpop.eup %591 }
  0x98   :  { %68 = vrot.lane.b32.xlu1 %v683_v43, %s622_s0  ;;  %v58_v49 = vmul.f32 %v56_v44, %v50_v48  ;;  %v308_v55 = vadd.f32 1.0, %v592_v52  ;;  %v594_v56 = vpop.eup %593 }
  0x99   :  { %203 = vrot.lane.b32.xlu0 %v685_v47, %s622_s0  ;;  %v194_v54 = vmul.f32 %v192_v50, %v186_v53  ;;  %v596_v58 = vpop.eup %595  ;;  %v425_v60 = vadd.f32 1.0, %v594_v56 }
  0x9a   :  { %v699_v59 = vmul.f32 %v308_v55, %v302_v57  ;;  %v309_v62 = vadd.f32 1.0, %v596_v58  ;;  %v598_v63 = vpop.eup %597 }
  0x9b   :  { %v704_v0 = vmul.f32 %v425_v60, %v419_v61  ;;  %v426_v3 = vadd.f32 1.0, %v598_v63 }
  0x9c   :  { %70 = vrot.lane.b32.xlu1 %v58_v49, %s622_s0  ;;  %v709_v2 = vmul.f32 %v309_v62, %v303_v1 }
  0x9d   :  { %59 = vrot.lane.b32.xlu0 %v683_v43, %s624_s1  ;;  %v715_v5 = vmul.f32 %v426_v3, %v420_v4 }
  0xa0   :  { %205 = vrot.lane.b32.xlu1 %v194_v54, %s622_s0 }
  0xa1   :  { %195 = vrot.lane.b32.xlu0 %v685_v47, %s624_s1 }
  0xa4   :  { %61 = vrot.lane.b32.xlu1 %v58_v49, %s624_s1 }
  0xa5   :  { %320 = vrot.lane.b32.xlu0 %v699_v59, %s622_s0 }
  0xa8   :  { %197 = vrot.lane.b32.xlu1 %v194_v54, %s624_s1 }
  0xa9   :  { %437 = vrot.lane.b32.xlu0 %v704_v0, %s622_s0 }
  0xac   :  { %322 = vrot.lane.b32.xlu1 %v709_v2, %s622_s0 }
  0xad   :  { %312 = vrot.lane.b32.xlu0 %v699_v59, %s624_s1 }
  0xb0   :  { %439 = vrot.lane.b32.xlu1 %v715_v5, %s622_s0 }
  0xb1   :  { %429 = vrot.lane.b32.xlu0 %v704_v0, %s624_s1 }
  0xb4   :  { %314 = vrot.lane.b32.xlu1 %v709_v2, %s624_s1 }
  0xb5   :  { %79 = vperm.xlu0 %581, %v22_v6  }
  0xb8   :  { %431 = vrot.lane.b32.xlu1 %v715_v5, %s624_s1 }
  0xbc   :  { %84 = vperm.xlu1 %582, %v23_v7  }
 0x10a   :  { %v69_v11 = vpop.permute.xlu1 %68 }
 0x10b   :  { %v204_v12 = vpop.permute.xlu0 %203 }
 0x10e   :  { %v71_v13 = vpop.permute.xlu1 %70 }
 0x10f   :  { %v60_v14 = vpop.permute.xlu0 %59  ;;  %v74_v15 = vsel %vm72_vm0, %v71_v13, %v69_v11  ;;  %v73_v16 = vsel %vm72_vm0, %v69_v11, %v71_v13 }
 0x110   :  { %543 = vmatprep.subr.msk.mxu0 %vm572_vm1, %v74_v15 }
 0x111   :  { %121 = vmatpush1.msra.mxu0 %v73_v16 }
 0x112   :  { %122 = vmatprep.subr.mxu0 %v58_v49  ;;  %v206_v17 = vpop.permute.xlu1 %205 }
 0x113   :  { %v196_v18 = vpop.permute.xlu0 %195  ;;  %123 = vmatpush1.msra.mxu0 %v683_v43  ;;  %v208_v19 = vsel %vm72_vm0, %v206_v17, %v204_v12  ;;  %v207_v20 = vsel %vm72_vm0, %v204_v12, %v206_v17 }
 0x114   :  { %551 = vmatprep.subr.msk.mxu1 %vm572_vm1, %v208_v19 }
 0x115   :  { %238 = vmatpush1.msra.mxu1 %v207_v20 }
 0x116   :  { %v62_v21 = vpop.permute.xlu1 %61  ;;  %239 = vmatprep.subr.mxu1 %v194_v54 }
 0x117   :  { %v65_v22 = vsel %vm63_vm2, %v62_v21, %v60_v14  ;;  %240 = vmatpush1.msra.mxu1 %v685_v47  ;;  %v64_v23 = vsel %vm63_vm2, %v60_v14, %v62_v21  ;;  %v321_v25 = vpop.permute.xlu0 %320 }
 0x118   :  { %124 = vmatprep.subr.mxu0 %v64_v23 }
 0x119   :  { %545 = vmatpush1.msk.msra.mxu0 %vm573_vm3, %v65_v22 }
 0x11a   :  { %v198_v26 = vpop.permute.xlu1 %197  ;;  %546 = vmatmul.mubr.msk.f32.vlgmr.msra.gmra.mxu0 %vm87_vm4, %v20_v24 }
 0x11b   :  { %v200_v27 = vsel %vm63_vm2, %v198_v26, %v196_v18  ;;  %v199_v28 = vsel %vm63_vm2, %v196_v18, %v198_v26  ;;  %164 = vmatprep.mubr.f32.mxu0 %v623_v51  ;;  %v438_v30 = vpop.permute.xlu0 %437 }
 0x11c   :  { %241 = vmatprep.subr.mxu1 %v199_v28 }
 0x11d   :  { %553 = vmatpush1.msk.msra.mxu1 %vm573_vm3, %v200_v27 }
 0x11e   :  { %v323_v31 = vpop.permute.xlu1 %322  ;;  %554 = vmatmul.mubr.msk.f32.vlgmr.msra.gmra.mxu1 %vm87_vm4, %v20_v24  ;;  %547 = vmatmul.mubr.msk.f32.gmra.mxu0 %vm87_vm4, %v21_v29 }
 0x11f   :  { %v324_v32 = vsel %vm72_vm0, %v321_v25, %v323_v31  ;;  %v325_v33 = vsel %vm72_vm0, %v323_v31, %v321_v25  ;;  %281 = vmatprep.mubr.f32.mxu1 %v623_v51  ;;  %392 = vmatprep.mubr.f32.mxu0 %v623_v51  ;;  %v313_v37 = vpop.permute.xlu0 %312 }
 0x120   :  { %559 = vmatprep.subr.msk.mxu0 %vm572_vm1, %v325_v33 }
 0x121   :  { %355 = vmatpush1.msra.mxu0 %v324_v32 }
 0x122   :  { %v440_v34 = vpop.permute.xlu1 %439  ;;  %356 = vmatprep.subr.mxu0 %v709_v2  ;;  %555 = vmatmul.mubr.msk.f32.gmra.mxu1 %vm87_vm4, %v21_v29 }
 0x123   :  { %v441_v35 = vsel %vm72_vm0, %v438_v30, %v440_v34  ;;  %v442_v36 = vsel %vm72_vm0, %v440_v34, %v438_v30  ;;  %357 = vmatpush1.msra.mxu0 %v699_v59  ;;  %509 = vmatprep.mubr.f32.mxu1 %v623_v51  ;;  %v430_v41 = vpop.permute.xlu0 %429 }
 0x124   :  { %567 = vmatprep.subr.msk.mxu1 %vm572_vm1, %v442_v36 }
 0x125   :  { %472 = vmatpush1.msra.mxu1 %v441_v35 }
 0x126   :  { %v315_v38 = vpop.permute.xlu1 %314  ;;  %473 = vmatprep.subr.mxu1 %v715_v5 }
 0x127   :  { %v317_v39 = vsel %vm63_vm2, %v315_v38, %v313_v37  ;;  %474 = vmatpush1.msra.mxu1 %v704_v0  ;;  %v316_v40 = vsel %vm63_vm2, %v313_v37, %v315_v38 }
 0x128   :  { %358 = vmatprep.subr.mxu0 %v316_v40 }
 0x129   :  { %561 = vmatpush1.msk.msra.mxu0 %vm573_vm3, %v317_v39 }
 0x12a   :  { %v432_v42 = vpop.permute.xlu1 %431  ;;  %562 = vmatmul.mubr.msk.f32.vlgmr.msra.gmra.mxu0 %vm87_vm4, %v20_v24 }
 0x12b   :  { %v434_v43 = vsel %vm63_vm2, %v432_v42, %v430_v41  ;;  %v433_v44 = vsel %vm63_vm2, %v430_v41, %v432_v42  ;;  %398 = vmatprep.mubr.f32.mxu0 %v623_v51 }
 0x12c   :  { %475 = vmatprep.subr.mxu1 %v433_v44 }
 0x12d   :  { %569 = vmatpush1.msk.msra.mxu1 %vm573_vm3, %v434_v43 }
 0x12e   :  { %570 = vmatmul.mubr.msk.f32.vlgmr.msra.gmra.mxu1 %vm87_vm4, %v20_v24  ;;  %563 = vmatmul.mubr.msk.f32.gmra.mxu0 %vm87_vm4, %v21_v29 }
 0x12f   :  { %515 = vmatprep.mubr.f32.mxu1 %v623_v51 }
 0x130   :  { %v80_v45 = vpop.permute.xlu0 %79 }
 0x132   :  { %571 = vmatmul.mubr.msk.f32.gmra.mxu1 %vm87_vm4, %v21_v29 }
 0x137   :  { %v85_v49 = vpop.permute.xlu1 %84 }
 0x1da   :  { %v160_v46 = vpop.f32.mrf.mxu0 }
 0x1db   :  { %v161_v47 = vadd.f32 %v160_v46, %v80_v45 }
 0x1dc   :  { %v162_v48 = vpop.f32.mrf.mxu0 }
 0x1dd   :  { %171 = vst [vmem:[#allocation2 + $0x10] sm:$0xff] %v161_v47  ;;  %v163_v50 = vadd.f32 %v162_v48, %v80_v45 }
 0x1de   :  { %v277_v52 = vpop.f32.mrf.mxu1  ;;  %v166_v53 = vpop.f32.mrf.mxu0 }
 0x1df   :  { %172 = vst [vmem:[#allocation2 + $0x18] sm:$0xff] %v163_v50  ;;  %v278_v54 = vadd.f32 %v277_v52, %v80_v45  ;;  %v167_v55 = vadd.f32 %v166_v53, %v85_v49 }
 0x1e0   :  { %v279_v56 = vpop.f32.mrf.mxu1  ;;  %v168_v57 = vpop.f32.mrf.mxu0 }
 0x1e1   :  { %288 = vst [vmem:[#allocation2 + $0x40] sm:$0xff] %v278_v54  ;;  %v280_v58 = vadd.f32 %v279_v56, %v80_v45  ;;  %v169_v59 = vadd.f32 %v168_v57, %v85_v49  ;;  %173 = vst [vmem:[#allocation2 + $0x20] sm:$0xff] %v167_v55 }
 0x1e2   :  { %v283_v51 = vpop.f32.mrf.mxu1 }
 0x1e3   :  { %289 = vst [vmem:[#allocation2 + $0x48] sm:$0xff] %v280_v58  ;;  %174 = vst [vmem:[#allocation2 + $0x28] sm:$0xff] %v169_v59  ;;  %v284_v60 = vadd.f32 %v283_v51, %v85_v49 }
 0x1e4   :  { %v285_v61 = vpop.f32.mrf.mxu1 }
 0x1e5   :  { %290 = vst [vmem:[#allocation2 + $0x50] sm:$0xff] %v284_v60  ;;  %v286_v62 = vadd.f32 %v285_v61, %v85_v49 }
 0x1e7   :  { %291 = vst [vmem:[#allocation2 + $0x58] sm:$0xff] %v286_v62 }
 0x1ea   :  { %v394_v63 = vpop.f32.mrf.mxu0 }
 0x1eb   :  { %v395_v0 = vadd.f32 %v394_v63, %v80_v45 }
 0x1ec   :  { %v396_v1 = vpop.f32.mrf.mxu0 }
 0x1ed   :  { %405 = vst [vmem:[#allocation2 + $0x70] sm:$0xff] %v395_v0  ;;  %v397_v2 = vadd.f32 %v396_v1, %v80_v45 }
 0x1ee   :  { %v511_v3 = vpop.f32.mrf.mxu1  ;;  %v400_v4 = vpop.f32.mrf.mxu0 }
 0x1ef   :  { %406 = vst [vmem:[#allocation2 + $0x78] sm:$0xff] %v397_v2  ;;  %v512_v5 = vadd.f32 %v511_v3, %v80_v45  ;;  %v401_v6 = vadd.f32 %v400_v4, %v85_v49 }
 0x1f0   :  { %v513_v7 = vpop.f32.mrf.mxu1  ;;  %v402_v8 = vpop.f32.mrf.mxu0 }
 0x1f1   :  { %522 = vst [vmem:[#allocation2 + $0xa0] sm:$0xff] %v512_v5  ;;  %v514_v9 = vadd.f32 %v513_v7, %v80_v45  ;;  %407 = vst [vmem:[#allocation2 + $0x80] sm:$0xff] %v401_v6  ;;  %v403_v10 = vadd.f32 %v402_v8, %v85_v49 }
 0x1f2   :  { %v517_v11 = vpop.f32.mrf.mxu1 }
 0x1f3   :  { %523 = vst [vmem:[#allocation2 + $0xa8] sm:$0xff] %v514_v9  ;;  %v518_v12 = vadd.f32 %v517_v11, %v85_v49  ;;  %408 = vst [vmem:[#allocation2 + $0x88] sm:$0xff] %v403_v10 }
 0x1f4   :  { %v519_v13 = vpop.f32.mrf.mxu1 }
 0x1f5   :  { %524 = vst [vmem:[#allocation2 + $0xb0] sm:$0xff] %v518_v12  ;;  %v520_v14 = vadd.f32 %v519_v13, %v85_v49 }
 0x1f7   :  { %525 = vst [vmem:[#allocation2 + $0xb8] sm:$0xff] %v520_v14 }
 0x1f8   :  { %610 = shalt.err (!%p607_p4)
}
 0x1f9   :  { %s626_s18 = smov 256   ;;  %s627_s19 = smov 16  }
 0x1fa   :  { %537 = dma.vmem_to_hbm [thread:$0]  %s532_s16, 3072, %s814_s4, [#allocation3], %s626_s18, %s626_s18, %s627_s19  }
 0x1fb   :  { %619 = dma.done.wait [#allocation3], 3072  }
 0x1fc   :  { %620 = vsyncadd [#allocation3], 4294964224 }
 0x1fd   :  { %541 = vsyncpa [#allocation3], 1 }

</bundles_post_ra>
